<compile_context>
chip_gen: v5e
topology: v5e:2x2
jax: 0.10.0
libtpu: 0.0.40
codegen_flags: <defaults>
</compile_context>

<pallas_src>
import math

import jax
import jax.numpy as jnp
from jax.experimental import pallas as pl
from jax.experimental.pallas import tpu as pltpu


def _scaling_kernel(z_ref, s_ref, x_ref):
    """One batch tile: x = z * exp(scale).  s_ref holds the (1, Zp) f32 scale row."""
    e = jnp.exp(s_ref[...])                                  # EUP, one row
    if z_ref.dtype == jnp.bfloat16:
        # bf16 VPU path (v6e/v7x): packed [16,128] vregs, no full-tile upcast.
        x_ref[...] = z_ref[...] * e.astype(jnp.bfloat16)
    else:
        x_ref[...] = (z_ref[...].astype(jnp.float32) * e).astype(x_ref.dtype)


def scaling_forward(z, scale, *, vmem_budget_bytes=8 * 1024 * 1024,
                    min_pallas_elems=1024):
    """x = z * exp(scale), log_det = sum(scale).  scale is (1, z_size)."""
    B, Z = z.shape
    out_dtype = z.dtype
    scale_f32 = scale.reshape(1, Z).astype(jnp.float32)

    # Parameter-only, batch-independent scalar: compute once in the wrapper.
    log_det = jnp.sum(scale)

    # Tiny-input fast path: launch overhead dominates sub-vreg workloads.
    if B * Z < min_pallas_elems:
        x = (z.astype(jnp.float32) * jnp.exp(scale_f32)).astype(out_dtype)
        return x, log_det

    # --- Lane packing (free contiguous reshape only): fold r batch rows into
    # one row so the lane dim is a multiple of 128 -> dense vregs / unmasked vst.
    r = 1
    if Z % 128 != 0:
        r_cand = math.lcm(Z, 128) // Z
        if r_cand > 1 and B % r_cand == 0:
            r = r_cand
    Bp, Zp = B // r, Z * r
    zw = z.reshape(Bp, Zp)
    sw = jnp.tile(scale_f32, (1, r)) if r > 1 else scale_f32      # (1, Zp) f32

    # --- Batch-tile selection: size by bytes (double-buffered in + out block),
    # cap at 2048 rows (~85-86% of HBM roofline already at 512-1024 rows), and
    # never split a batch that fits in one block (no forced 2-way split on
    # single-core parts).  Large batches get >= 4 steps automatically.
    item = z.dtype.itemsize
    sub = {4: 8, 2: 16, 1: 32}.get(item, 8)                   # sublane packing / dtype
    bytes_per_row = 2 * Zp * (item + item)                    # 2x buffers, in + out
    rows_by_bytes = max(sub, (vmem_budget_bytes // bytes_per_row) // sub * sub)
    tb_rows = max(sub, min(2048, rows_by_bytes))
    if Bp <= tb_rows:
        tb, grid_b = Bp, 1            # full-extent batch block (valid for any Bp)
    else:
        tb, grid_b = tb_rows, pl.cdiv(Bp, tb_rows)   # ragged last block masked by Pallas

    x_p = pl.pallas_call(
        _scaling_kernel,
        out_shape=jax.ShapeDtypeStruct((Bp, Zp), out_dtype),
        grid=(grid_b,),
        in_specs=[
            pl.BlockSpec((tb, Zp), lambda i: (i, 0)),         # z batch tile
            pl.BlockSpec((1, Zp), lambda i: (0, 0)),          # scale row (broadcast)
        ],
        out_specs=pl.BlockSpec((tb, Zp), lambda i: (i, 0)),   # lane-dense output tile
        compiler_params=pltpu.CompilerParams(
            dimension_semantics=("parallel",)),               # megacore-shardable
    )(zw, sw)

    return x_p.reshape(B, Z), log_det


if __name__ == "__main__":
    key = jax.random.PRNGKey(0)
    ks = jax.random.split(key, 10)

    def check(x, ld, z, scale, tol):
        x_ref = z.astype(jnp.float32) * jnp.exp(scale.astype(jnp.float32))
        assert x.shape == z.shape and x.dtype == z.dtype and ld.shape == ()
        assert jnp.allclose(x.astype(jnp.float32), x_ref, atol=tol, rtol=tol)
        assert jnp.allclose(ld, jnp.sum(scale), atol=1e-5, rtol=1e-5)

    # 1) Module's natural shape (batch=8, z_size=32): tiny-input fast path.
    s1 = (0.1 * jax.random.normal(ks[0], (1, 32))).astype(jnp.float32)
    z1 = jax.random.normal(ks[1], (8, 32), dtype=jnp.float32)
    x1, ld1 = scaling_forward(z1, s1)
    jax.block_until_ready((x1, ld1))
    check(x1, ld1, z1, s1, 1e-6)

    # 2) Kernel path, lane-packed r=4 (Z=32 -> Zp=128), single block.
    s2 = (0.1 * jax.random.normal(ks[2], (1, 32))).astype(jnp.float32)
    z2 = jax.random.normal(ks[3], (512, 32), dtype=jnp.float32)
    x2, ld2 = scaling_forward(z2, s2)
    jax.block_until_ready((x2, ld2))
    check(x2, ld2, z2, s2, 1e-6)

    # 3) Kernel path, no packing (B % r != 0), full-extent single block, Z=48.
    s3 = (0.1 * jax.random.normal(ks[4], (1, 48))).astype(jnp.float32)
    z3 = jax.random.normal(ks[5], (300, 48), dtype=jnp.float32)
    x3, ld3 = scaling_forward(z3, s3)
    jax.block_until_ready((x3, ld3))
    check(x3, ld3, z3, s3, 1e-6)

    # 4) Kernel path, packed, multi-step grid with a ragged (masked) last block.
    s4 = (0.1 * jax.random.normal(ks[6], (1, 32))).astype(jnp.float32)
    z4 = jax.random.normal(ks[7], (10000, 32), dtype=jnp.float32)
    x4, ld4 = scaling_forward(z4, s4)
    jax.block_until_ready((x4, ld4))
    check(x4, ld4, z4, s4, 1e-6)

    # 5) bf16 kernel path (packed r=2, bf16 multiply, f32 exp).
    s5 = (0.1 * jax.random.normal(ks[8], (1, 64))).astype(jnp.float32)
    z5 = jax.random.normal(ks[9], (1024, 64), dtype=jnp.bfloat16)
    x5, ld5 = scaling_forward(z5, s5)
    jax.block_until_ready((x5, ld5))
    check(x5, ld5, z5, s5, 2e-2)

    print("KERNEL_OK")
</pallas_src>

<mosaic_0001>
module attributes {stable_mosaic.version = 11 : i64} {
  func.func @_scaling_kernel(%arg0: i32, %arg1: memref<128x128xf32, #tpu.memory_space<vmem>>, %arg2: memref<1x128xf32, #tpu.memory_space<vmem>>, %arg3: memref<128x128xf32, #tpu.memory_space<vmem>>) attributes {dimension_semantics = [#tpu.dimension_semantics<parallel>], iteration_bounds = array<i64: 1>, scalar_prefetch = 0 : i64, scratch_operands = 0 : i64, tpu.core_type = #tpu.core_type<tc>, window_params = [{transform_indices = @transform_0, window_bounds = array<i64: 128, 128>}, {pipeline_mode = #tpu.pipeline_mode<synchronous>, transform_indices = @transform_1, window_bounds = array<i64: 1, 128>}, {transform_indices = @transform_2, window_bounds = array<i64: 128, 128>}]} {
    %c0 = arith.constant 0 : index
    %c0_0 = arith.constant 0 : index
    %0 = vector.load %arg2[%c0, %c0_0] : memref<1x128xf32, #tpu.memory_space<vmem>>, vector<1x128xf32>
    %1 = math.exp %0 : vector<1x128xf32>
    %c0_1 = arith.constant 0 : index
    %c0_2 = arith.constant 0 : index
    %2 = vector.load %arg1[%c0_1, %c0_2] : memref<128x128xf32, #tpu.memory_space<vmem>>, vector<128x128xf32>
    %3 = vector.broadcast %1 : vector<1x128xf32> to vector<128x128xf32>
    %4 = arith.mulf %2, %3 : vector<128x128xf32>
    %c0_3 = arith.constant 0 : index
    %c0_4 = arith.constant 0 : index
    %5 = vector.load %arg3[%c0_3, %c0_4] : memref<128x128xf32, #tpu.memory_space<vmem>>, vector<128x128xf32>
    tpu.vector_store %arg3[%c0_3, %c0_4], %4 {strides = array<i32>} : memref<128x128xf32, #tpu.memory_space<vmem>>, vector<128x128xf32>,
    return
  }
  func.func @transform_0(%arg0: i32) -> (i32, i32) {
    %c0_i32 = arith.constant 0 : i32
    %c0_i32_0 = arith.constant 0 : i32
    return %arg0, %c0_i32 : i32, i32
  }
  func.func @transform_1(%arg0: i32) -> (i32, i32) {
    %c0_i32 = arith.constant 0 : i32
    %c0_i32_0 = arith.constant 0 : i32
    %c0_i32_1 = arith.constant 0 : i32
    return %c0_i32, %c0_i32_0 : i32, i32
  }
  func.func @transform_2(%arg0: i32) -> (i32, i32) {
    %c0_i32 = arith.constant 0 : i32
    %c0_i32_0 = arith.constant 0 : i32
    return %arg0, %c0_i32 : i32, i32
  }
}

</mosaic_0001>

<bundles_post_ra>
// kernel: tpu_custom_call.1
= control target key start
LH: loop header
LB: loop body
LE: loop exit
PB: predicated region body
PF: predicated region fallthrough
CT: control target
= control target key end

     0   :  { %7 = vsyncpa [#allocation3], 0  ;;  %s236_s0 = inlined_call_operand.hbm [shape: f32[128,128], index: 0, kind: input, shape index: {}]   ;;  %s237_s1 = inlined_call_operand.hbm [shape: f32[1,128], index: 1, kind: input, shape index: {}]   ;;  %s238_s2 = inlined_call_operand.hbm [shape: f32[128,128], index: 2, kind: output, shape index: {}]  }
   0x1   :  { %8 = vsyncpa [#allocation6], 0 }
   0x2   :  { %9 = vsyncpa [#allocation4], 0  ;;  %s14_s11 = sshll.u32 %s236_s0, 4  ;;  %s201_s12 = smov [#allocation2]   ;;  %s15_s11 = int_to_ptr.hbm [resolvable:$true] %s14_s11 }
   0x3   :  { %s16_s13 = sshll.u32 %s201_s12, 4  ;;  %s28_s16 = sshll.u32 %s237_s1, 4  ;;  %s17_s13 = int_to_ptr.vmem [resolvable:$true] %s16_s13  ;;  %s29_s16 = int_to_ptr.hbm [resolvable:$true] %s28_s16 }
   0x4   :  { %s202_s17 = smov 128   ;;  %s203_s18 = smov 8  }
   0x5   :  { %22 = dma.hbm_to_vmem [thread:$0]  %s15_s11, 2048, %s17_s13, [#allocation3], %s202_s17, %s202_s17, %s203_s18  }
   0x6   :  { %s204_s19 = smov [#allocation5]  }
   0x7   :  { %s30_s20 = sshll.u32 %s204_s19, 4  ;;  %s31_s20 = int_to_ptr.vmem [resolvable:$true] %s30_s20 }
   0x8   :  { %33 = dma.hbm_to_vmem [thread:$0]  %s29_s16, 16, %s31_s20, [#allocation6]  }
   0x9   :  { %195 = dma.done.wait [#allocation3], 2048  }
   0xa   :  { %196 = vsyncadd [#allocation3], 4294965248 }
   0xb   :  { %197 = dma.done.wait [#allocation6], 16  }
   0xc   :  { %198 = vsyncadd [#allocation6], 4294967280  ;;  %v42_v0 = vld [vmem:[#allocation5] sm:$0x1]  ;;  %v46_v4 = vld [vmem:[#allocation2 + $0x8] sm:$0xff]  ;;  %s205_s0 = smov [#allocation7]  }
   0xd   :  { %v43_v1 = vmul.f32 1.442695, %v42_v0  ;;  %v45_v3 = vld [vmem:[#allocation2] sm:$0xff]  ;;  %v47_v5 = vld [vmem:[#allocation2 + $0x10] sm:$0xff]  ;;  %v48_v7 = vld [vmem:[#allocation2 + $0x18] sm:$0xff]  ;;  %s100_s1 = sshll.u32 %s205_s0, 4  ;;  %s101_s1 = int_to_ptr.vmem [resolvable:$true] %s100_s1 }
   0xe   :  { %v49_v8 = vld [vmem:[#allocation2 + $0x20] sm:$0xff]  ;;  %v50_v12 = vld [vmem:[#allocation2 + $0x28] sm:$0xff]  ;;  %v51_v14 = vld [vmem:[#allocation2 + $0x30] sm:$0xff]  ;;  %s102_s23 = sshll.u32 %s238_s2, 4  ;;  %s103_s23 = int_to_ptr.hbm [resolvable:$true] %s102_s23 }
   0xf   :  { %121 = vpow2.f32 %v43_v1  ;;  %v52_v16 = vld [vmem:[#allocation2 + $0x38] sm:$0xff]  ;;  %v53_v18 = vld [vmem:[#allocation2 + $0x40] sm:$0xff]  ;;  %v54_v20 = vld [vmem:[#allocation2 + $0x48] sm:$0xff] }
  0x10   :  { %v55_v22 = vld [vmem:[#allocation2 + $0x50] sm:$0xff]  ;;  %v56_v24 = vld [vmem:[#allocation2 + $0x58] sm:$0xff]  ;;  %v57_v26 = vld [vmem:[#allocation2 + $0x60] sm:$0xff] }
  0x11   :  { %v58_v28 = vld [vmem:[#allocation2 + $0x68] sm:$0xff]  ;;  %v59_v30 = vld [vmem:[#allocation2 + $0x70] sm:$0xff]  ;;  %v60_v32 = vld [vmem:[#allocation2 + $0x78] sm:$0xff] }
  0x15   :  { %v122_v2 = vpop.eup %121 }
  0x16   :  { %v62_v6 = vperm.slane %v122_v2, 0 }
  0x18   :  { %v64_v9 = vmul.f32 %v62_v6, %v45_v3  ;;  %v65_v10 = vmul.f32 %v62_v6, %v46_v4  ;;  %v66_v11 = vmul.f32 %v62_v6, %v47_v5  ;;  %v67_v13 = vmul.f32 %v62_v6, %v48_v7 }
  0x19   :  { %v68_v15 = vmul.f32 %v62_v6, %v49_v8  ;;  %v69_v17 = vmul.f32 %v62_v6, %v50_v12  ;;  %v70_v19 = vmul.f32 %v62_v6, %v51_v14  ;;  %v71_v21 = vmul.f32 %v62_v6, %v52_v16 }
  0x1a   :  { %80 = vst [vmem:[#allocation7] sm:$0xff] %v64_v9  ;;  %v72_v23 = vmul.f32 %v62_v6, %v53_v18  ;;  %v73_v25 = vmul.f32 %v62_v6, %v54_v20  ;;  %v74_v27 = vmul.f32 %v62_v6, %v55_v22  ;;  %v75_v29 = vmul.f32 %v62_v6, %v56_v24 }
  0x1b   :  { %81 = vst [vmem:[#allocation7 + $0x8] sm:$0xff] %v65_v10  ;;  %v76_v31 = vmul.f32 %v62_v6, %v57_v26  ;;  %v77_v33 = vmul.f32 %v62_v6, %v58_v28  ;;  %v78_v34 = vmul.f32 %v62_v6, %v59_v30  ;;  %v79_v35 = vmul.f32 %v62_v6, %v60_v32 }
  0x1c   :  { %82 = vst [vmem:[#allocation7 + $0x10] sm:$0xff] %v66_v11 }
  0x1d   :  { %83 = vst [vmem:[#allocation7 + $0x18] sm:$0xff] %v67_v13 }
  0x1e   :  { %84 = vst [vmem:[#allocation7 + $0x20] sm:$0xff] %v68_v15 }
  0x1f   :  { %85 = vst [vmem:[#allocation7 + $0x28] sm:$0xff] %v69_v17 }
  0x20   :  { %86 = vst [vmem:[#allocation7 + $0x30] sm:$0xff] %v70_v19 }
  0x21   :  { %87 = vst [vmem:[#allocation7 + $0x38] sm:$0xff] %v71_v21 }
  0x22   :  { %88 = vst [vmem:[#allocation7 + $0x40] sm:$0xff] %v72_v23 }
  0x23   :  { %89 = vst [vmem:[#allocation7 + $0x48] sm:$0xff] %v73_v25 }
  0x24   :  { %90 = vst [vmem:[#allocation7 + $0x50] sm:$0xff] %v74_v27 }
  0x25   :  { %91 = vst [vmem:[#allocation7 + $0x58] sm:$0xff] %v75_v29 }
  0x26   :  { %92 = vst [vmem:[#allocation7 + $0x60] sm:$0xff] %v76_v31 }
  0x27   :  { %93 = vst [vmem:[#allocation7 + $0x68] sm:$0xff] %v77_v33 }
  0x28   :  { %94 = vst [vmem:[#allocation7 + $0x70] sm:$0xff] %v78_v34 }
  0x29   :  { %95 = vst [vmem:[#allocation7 + $0x78] sm:$0xff] %v79_v35 }
  0x2a   :  { %108 = dma.vmem_to_hbm [thread:$0]  %s101_s1, 2048, %s103_s23, [#allocation4], %s202_s17, %s202_s17, %s203_s18  }
  0x2b   :  { %199 = dma.done.wait [#allocation4], 2048  }
  0x2c   :  { %200 = vsyncadd [#allocation4], 4294965248 }
  0x2d   :  { %113 = vsyncpa [#allocation3], 1 }
  0x2e   :  { %114 = vsyncpa [#allocation6], 1 }
  0x2f   :  { %115 = vsyncpa [#allocation4], 1 }

</bundles_post_ra>
